<compile_context>
chip_gen: v5e
topology: v5e:2x2
jax: 0.10.0
libtpu: 0.0.40
codegen_flags: <defaults>
</compile_context>

<pallas_src>
import math
import collections.abc
from itertools import repeat
from functools import partial

import jax
import jax.numpy as jnp
from jax.experimental import pallas as pl
from jax.experimental.pallas import tpu as pltpu


def to_2tuple(x):
    if isinstance(x, collections.abc.Iterable):
        return tuple(x)
    return tuple(repeat(x, 2))


def get_pad_shape(input_shape, kernel_size, stride, dilation):
    """Identical math to AdaptivePadding.get_pad_shape (static, Python ints)."""
    input_h, input_w = input_shape
    kernel_h, kernel_w = kernel_size
    stride_h, stride_w = stride
    output_h = math.ceil(input_h / stride_h)
    output_w = math.ceil(input_w / stride_w)
    pad_h = max((output_h - 1) * stride_h + (kernel_h - 1) * dilation[0] + 1 - input_h, 0)
    pad_w = max((output_w - 1) * stride_w + (kernel_w - 1) * dilation[1] + 1 - input_w, 0)
    return pad_h, pad_w


def _pad_kernel(x_ref, o_ref, *, in_h, in_w,
                pad_top, pad_bottom, pad_left, pad_right):
    # x_ref: (TN, H, W) block; o_ref: (TN, H_out, W_out) block.
    tn = o_ref.shape[0]
    dt = o_ref.dtype
    w_out = in_w + pad_left + pad_right

    # Interior: single store of the input block at its static offset.
    o_ref[:, pl.ds(pad_top, in_h), pl.ds(pad_left, in_w)] = x_ref[...]

    # Zero only the pad strips (no redundant full-plane zero fill).
    # All pad amounts are compile-time constants, so these are static branches.
    if pad_top > 0:
        o_ref[:, pl.ds(0, pad_top), :] = jnp.zeros((tn, pad_top, w_out), dt)
    if pad_bottom > 0:
        o_ref[:, pl.ds(pad_top + in_h, pad_bottom), :] = (
            jnp.zeros((tn, pad_bottom, w_out), dt))
    if pad_left > 0:
        o_ref[:, pl.ds(pad_top, in_h), pl.ds(0, pad_left)] = (
            jnp.zeros((tn, in_h, pad_left), dt))
    if pad_right > 0:
        o_ref[:, pl.ds(pad_top, in_h), pl.ds(pad_left + in_w, pad_right)] = (
            jnp.zeros((tn, in_h, pad_right), dt))


def adaptive_padding(x, kernel_size=1, stride=1, dilation=1, padding='corner',
                     vmem_block_budget_bytes=8 * 1024 * 1024):
    """Pallas implementation of AdaptivePadding.forward.

    Args:
      x: array of shape (B, C, H, W).
    Returns:
      array of shape (B, C, H + pad_h, W + pad_w), zero-padded per `padding` mode.
    """
    assert padding in ('same', 'corner')
    kernel_size = to_2tuple(kernel_size)
    stride = to_2tuple(stride)
    dilation = to_2tuple(dilation)

    B, C, H, W = x.shape
    pad_h, pad_w = get_pad_shape((H, W), kernel_size, stride, dilation)

    if pad_h == 0 and pad_w == 0:
        return x

    if padding == 'corner':
        pad_top, pad_left = 0, 0
    else:  # 'same'
        pad_top, pad_left = pad_h // 2, pad_w // 2
    pad_bottom = pad_h - pad_top
    pad_right = pad_w - pad_left

    H_out, W_out = H + pad_h, W + pad_w

    # Collapse (B, C) -> N (free reshape) so each grid step owns many planes.
    N = B * C
    x_flat = x.reshape(N, H, W)

    # Largest plane-block that fits a conservative double-buffered VMEM budget.
    # 2 * TN * (in_plane + out_plane) bytes <= vmem_block_budget_bytes, which is
    # sized well under v7x's 64 MiB (and trivially under v5e/v6e's 128 MiB).
    dtype_bytes = jnp.dtype(x.dtype).itemsize
    per_plane = (H * W + H_out * W_out) * dtype_bytes
    tn = int(max(1, min(N, vmem_block_budget_bytes // (2 * per_plane))))
    # (Very large single planes that exceed the budget would want row tiling;
    #  not needed for the shapes this module sees.)
    grid = (pl.cdiv(N, tn),)

    kernel = partial(_pad_kernel, in_h=H, in_w=W,
                     pad_top=pad_top, pad_bottom=pad_bottom,
                     pad_left=pad_left, pad_right=pad_right)

    bytes_accessed = (N * H * W + N * H_out * W_out) * dtype_bytes

    out_flat = pl.pallas_call(
        kernel,
        out_shape=jax.ShapeDtypeStruct((N, H_out, W_out), x.dtype),
        grid_spec=pltpu.PrefetchScalarGridSpec(
            num_scalar_prefetch=0,
            grid=grid,
            in_specs=[pl.BlockSpec((tn, H, W), lambda n: (n, 0, 0))],
            out_specs=pl.BlockSpec((tn, H_out, W_out), lambda n: (n, 0, 0)),
        ),
        compiler_params=pltpu.CompilerParams(
            dimension_semantics=("parallel",),
            vmem_limit_bytes=32 * 1024 * 1024,
        ),
        cost_estimate=pl.CostEstimate(
            flops=0, transcendentals=0, bytes_accessed=bytes_accessed),
    )(x_flat)

    return out_flat.reshape(B, C, H_out, W_out)


def adaptive_padding_ref(x, kernel_size=1, stride=1, dilation=1, padding='corner'):
    """Pure-JAX reference (mirrors F.pad semantics in the PyTorch module)."""
    kernel_size = to_2tuple(kernel_size)
    stride = to_2tuple(stride)
    dilation = to_2tuple(dilation)
    H, W = x.shape[-2:]
    pad_h, pad_w = get_pad_shape((H, W), kernel_size, stride, dilation)
    if pad_h == 0 and pad_w == 0:
        return x
    if padding == 'corner':
        pads = ((0, 0), (0, 0), (0, pad_h), (0, pad_w))
    else:
        pads = ((0, 0), (0, 0),
                (pad_h // 2, pad_h - pad_h // 2),
                (pad_w // 2, pad_w - pad_w // 2))
    return jnp.pad(x, pads)


if __name__ == "__main__":
    key = jax.random.PRNGKey(0)
    # Small shape consistent with the module's (B, C, H, W) convention.
    x = jax.random.normal(key, (2, 4, 16, 16), dtype=jnp.float32)

    configs = [
        # kernel_size=3, stride=2 -> pad_h = pad_w = 1 (right/bottom only).
        dict(kernel_size=3, stride=2, dilation=1),
        # kernel_size=7, stride=4 -> pad_h = pad_w = 3 (exercises all 4 strips
        # in 'same' mode: top=1, bottom=2, left=1, right=2).
        dict(kernel_size=7, stride=4, dilation=1),
    ]

    ok = True
    for cfg in configs:
        for mode in ('corner', 'same'):
            out = adaptive_padding(x, padding=mode, **cfg)
            out = jax.block_until_ready(out)
            ref = adaptive_padding_ref(x, padding=mode, **cfg)
            if out.shape != ref.shape or not jnp.allclose(out, ref):
                ok = False

    if ok:
        print("KERNEL_OK")
</pallas_src>

<mosaic_0001>
module attributes {stable_mosaic.version = 11 : i64} {
  func.func @_pad_kernel(%arg0: i32, %arg1: memref<8x16x16xf32, #tpu.memory_space<vmem>>, %arg2: memref<8x17x17xf32, #tpu.memory_space<vmem>>) attributes {dimension_semantics = [#tpu.dimension_semantics<parallel>], iteration_bounds = array<i64: 1>, scalar_prefetch = 0 : i64, scratch_operands = 0 : i64, tpu.core_type = #tpu.core_type<tc>, window_params = [{transform_indices = @transform_0, window_bounds = array<i64: 8, 16, 16>}, {transform_indices = @transform_1, window_bounds = array<i64: 8, 17, 17>}]} {
    %c0 = arith.constant 0 : index
    %c0_0 = arith.constant 0 : index
    %c0_1 = arith.constant 0 : index
    %0 = vector.load %arg1[%c0, %c0_0, %c0_1] : memref<8x16x16xf32, #tpu.memory_space<vmem>>, vector<8x16x16xf32>
    %c0_2 = arith.constant 0 : index
    %c0_3 = arith.constant 0 : index
    %c0_4 = arith.constant 0 : index
    %1 = vector.load %arg2[%c0_2, %c0_3, %c0_4] : memref<8x17x17xf32, #tpu.memory_space<vmem>>, vector<8x16x16xf32>
    tpu.vector_store %arg2[%c0_2, %c0_3, %c0_4], %0 {strides = array<i32>} : memref<8x17x17xf32, #tpu.memory_space<vmem>>, vector<8x16x16xf32>,
    %cst = arith.constant 0.000000e+00 : f32
    %2 = vector.broadcast %cst : f32 to vector<8x1x17xf32>
    %c0_5 = arith.constant 0 : index
    %c16 = arith.constant 16 : index
    %c0_6 = arith.constant 0 : index
    %3 = vector.load %arg2[%c0_5, %c16, %c0_6] : memref<8x17x17xf32, #tpu.memory_space<vmem>>, vector<8x1x17xf32>
    tpu.vector_store %arg2[%c0_5, %c16, %c0_6], %2 {strides = array<i32>} : memref<8x17x17xf32, #tpu.memory_space<vmem>>, vector<8x1x17xf32>,
    %cst_7 = arith.constant 0.000000e+00 : f32
    %4 = vector.broadcast %cst_7 : f32 to vector<8x16x1xf32>
    %c0_8 = arith.constant 0 : index
    %c0_9 = arith.constant 0 : index
    %c16_10 = arith.constant 16 : index
    %5 = vector.load %arg2[%c0_8, %c0_9, %c16_10] : memref<8x17x17xf32, #tpu.memory_space<vmem>>, vector<8x16x1xf32>
    tpu.vector_store %arg2[%c0_8, %c0_9, %c16_10], %4 {strides = array<i32>} : memref<8x17x17xf32, #tpu.memory_space<vmem>>, vector<8x16x1xf32>,
    return
  }
  func.func @transform_0(%arg0: i32) -> (i32, i32, i32) {
    %c0_i32 = arith.constant 0 : i32
    %c0_i32_0 = arith.constant 0 : i32
    %c0_i32_1 = arith.constant 0 : i32
    return %arg0, %c0_i32, %c0_i32_0 : i32, i32, i32
  }
  func.func @transform_1(%arg0: i32) -> (i32, i32, i32) {
    %c0_i32 = arith.constant 0 : i32
    %c0_i32_0 = arith.constant 0 : i32
    %c0_i32_1 = arith.constant 0 : i32
    return %arg0, %c0_i32, %c0_i32_0 : i32, i32, i32
  }
}

</mosaic_0001>

<bundles_post_ra>
// kernel: tpu_custom_call.1
= control target key start
LH: loop header
LB: loop body
LE: loop exit
PB: predicated region body
PF: predicated region fallthrough
CT: control target
= control target key end

     0   :  { %6 = vsyncpa [#allocation3], 0  ;;  %s118_s9 = smov [#allocation2]   ;;  %s119_s11 = smov 128   ;;  %s295_s0 = inlined_call_operand.hbm [shape: f32[8,16,16], index: 0, kind: input, shape index: {}]   ;;  %s296_s1 = inlined_call_operand.vmem [shape: f32[8,17,17], index: 1, kind: output, shape index: {}]  }
   0x1   :  { %s11_s8 = sshll.u32 %s295_s0, 4  ;;  %s13_s10 = sshll.u32 %s118_s9, 4  ;;  %s12_s8 = int_to_ptr.hbm [resolvable:$true] %s11_s8  ;;  %s14_s10 = int_to_ptr.vmem [resolvable:$true] %s13_s10 }
   0x2   :  { %s120_s12 = smov 8  }
   0x3   :  { %19 = dma.hbm_to_vmem [thread:$0]  %s12_s8, 2048, %s14_s10, [#allocation3], %s119_s11, %s119_s11, %s120_s12  }
   0x4   :  { %116 = dma.done.wait [#allocation3], 2048  }
   0x5   :  { %117 = vsyncadd [#allocation3], 4294965248  ;;  %vm57_vm0 = vcmask 131072   ;;  %v121_v0 = vmov 0.0   ;;  %vm40_vm1 = vcmask 130048   ;;  %v24_v1 = vld [vmem:[#allocation2] sm:$0xff] }
   0x6   :  { %58 = vst.msk [vmem:[%s296_s1 + $0x10] sm:$0x1] %vm57_vm0, %v121_v0  ;;  %v25_v2 = vld [vmem:[#allocation2 + $0x8] sm:$0xff]  ;;  %v26_v3 = vld [vmem:[#allocation2 + $0x10] sm:$0xff]  ;;  %v27_v4 = vld [vmem:[#allocation2 + $0x18] sm:$0xff]  ;;  %vm66_vm2 = vcmask 138368  }
   0x7   :  { %59 = vst.msk [vmem:[%s296_s1 + $0x28] sm:$0x1] %vm57_vm0, %v121_v0  ;;  %v28_v5 = vld [vmem:[#allocation2 + $0x20] sm:$0xff]  ;;  %v29_v6 = vld [vmem:[#allocation2 + $0x28] sm:$0xff]  ;;  %v30_v7 = vld [vmem:[#allocation2 + $0x30] sm:$0xff] }
   0x8   :  { %60 = vst.msk [vmem:[%s296_s1 + $0x40] sm:$0x1] %vm57_vm0, %v121_v0  ;;  %v31_v8 = vld [vmem:[#allocation2 + $0x38] sm:$0xff]  ;;  %v32_v9 = vld [vmem:[#allocation2 + $0x40] sm:$0xff]  ;;  %v33_v10 = vld [vmem:[#allocation2 + $0x48] sm:$0xff] }
   0x9   :  { %61 = vst.msk [vmem:[%s296_s1 + $0x58] sm:$0x1] %vm57_vm0, %v121_v0  ;;  %v34_v11 = vld [vmem:[#allocation2 + $0x50] sm:$0xff]  ;;  %v35_v12 = vld [vmem:[#allocation2 + $0x58] sm:$0xff]  ;;  %v36_v13 = vld [vmem:[#allocation2 + $0x60] sm:$0xff] }
   0xa   :  { %62 = vst.msk [vmem:[%s296_s1 + $0x70] sm:$0x1] %vm57_vm0, %v121_v0  ;;  %v37_v14 = vld [vmem:[#allocation2 + $0x68] sm:$0xff]  ;;  %v38_v15 = vld [vmem:[#allocation2 + $0x70] sm:$0xff]  ;;  %v39_v16 = vld [vmem:[#allocation2 + $0x78] sm:$0xff] }
   0xb   :  { %63 = vst.msk [vmem:[%s296_s1 + $0x88] sm:$0x1] %vm57_vm0, %v121_v0 }
   0xc   :  { %64 = vst.msk [vmem:[%s296_s1 + $0xa0] sm:$0x1] %vm57_vm0, %v121_v0 }
   0xd   :  { %41 = vst.msk [vmem:[%s296_s1] sm:$0xff] %vm40_vm1, %v24_v1 }
   0xe   :  { %42 = vst.msk [vmem:[%s296_s1 + $0x8] sm:$0xff] %vm40_vm1, %v25_v2 }
   0xf   :  { %43 = vst.msk [vmem:[%s296_s1 + $0x18] sm:$0xff] %vm40_vm1, %v26_v3 }
  0x10   :  { %44 = vst.msk [vmem:[%s296_s1 + $0x20] sm:$0xff] %vm40_vm1, %v27_v4 }
  0x11   :  { %45 = vst.msk [vmem:[%s296_s1 + $0x30] sm:$0xff] %vm40_vm1, %v28_v5 }
  0x12   :  { %46 = vst.msk [vmem:[%s296_s1 + $0x38] sm:$0xff] %vm40_vm1, %v29_v6 }
  0x13   :  { %47 = vst.msk [vmem:[%s296_s1 + $0x48] sm:$0xff] %vm40_vm1, %v30_v7 }
  0x14   :  { %48 = vst.msk [vmem:[%s296_s1 + $0x50] sm:$0xff] %vm40_vm1, %v31_v8 }
  0x15   :  { %49 = vst.msk [vmem:[%s296_s1 + $0x60] sm:$0xff] %vm40_vm1, %v32_v9 }
  0x16   :  { %50 = vst.msk [vmem:[%s296_s1 + $0x68] sm:$0xff] %vm40_vm1, %v33_v10 }
  0x17   :  { %51 = vst.msk [vmem:[%s296_s1 + $0x78] sm:$0xff] %vm40_vm1, %v34_v11 }
  0x18   :  { %52 = vst.msk [vmem:[%s296_s1 + $0x80] sm:$0xff] %vm40_vm1, %v35_v12 }
  0x19   :  { %53 = vst.msk [vmem:[%s296_s1 + $0x90] sm:$0xff] %vm40_vm1, %v36_v13 }
  0x1a   :  { %54 = vst.msk [vmem:[%s296_s1 + $0x98] sm:$0xff] %vm40_vm1, %v37_v14 }
  0x1b   :  { %55 = vst.msk [vmem:[%s296_s1 + $0xa8] sm:$0xff] %vm40_vm1, %v38_v15 }
  0x1c   :  { %56 = vst.msk [vmem:[%s296_s1 + $0xb0] sm:$0xff] %vm40_vm1, %v39_v16 }
  0x1d   :  { %65 = vst.msk [vmem:[%s296_s1 + $0xb8] sm:$0x1] %vm57_vm0, %v121_v0 }
  0x1e   :  { %67 = vst.msk [vmem:[%s296_s1] sm:$0xff] %vm66_vm2, %v121_v0 }
  0x1f   :  { %68 = vst.msk [vmem:[%s296_s1 + $0x8] sm:$0xff] %vm66_vm2, %v121_v0 }
  0x20   :  { %69 = vst.msk [vmem:[%s296_s1 + $0x18] sm:$0xff] %vm66_vm2, %v121_v0 }
  0x21   :  { %70 = vst.msk [vmem:[%s296_s1 + $0x20] sm:$0xff] %vm66_vm2, %v121_v0 }
  0x22   :  { %71 = vst.msk [vmem:[%s296_s1 + $0x30] sm:$0xff] %vm66_vm2, %v121_v0 }
  0x23   :  { %72 = vst.msk [vmem:[%s296_s1 + $0x38] sm:$0xff] %vm66_vm2, %v121_v0 }
  0x24   :  { %73 = vst.msk [vmem:[%s296_s1 + $0x48] sm:$0xff] %vm66_vm2, %v121_v0 }
  0x25   :  { %74 = vst.msk [vmem:[%s296_s1 + $0x50] sm:$0xff] %vm66_vm2, %v121_v0 }
  0x26   :  { %75 = vst.msk [vmem:[%s296_s1 + $0x60] sm:$0xff] %vm66_vm2, %v121_v0 }
  0x27   :  { %76 = vst.msk [vmem:[%s296_s1 + $0x68] sm:$0xff] %vm66_vm2, %v121_v0 }
  0x28   :  { %77 = vst.msk [vmem:[%s296_s1 + $0x78] sm:$0xff] %vm66_vm2, %v121_v0 }
  0x29   :  { %78 = vst.msk [vmem:[%s296_s1 + $0x80] sm:$0xff] %vm66_vm2, %v121_v0 }
  0x2a   :  { %79 = vst.msk [vmem:[%s296_s1 + $0x90] sm:$0xff] %vm66_vm2, %v121_v0 }
  0x2b   :  { %80 = vst.msk [vmem:[%s296_s1 + $0x98] sm:$0xff] %vm66_vm2, %v121_v0 }
  0x2c   :  { %81 = vst.msk [vmem:[%s296_s1 + $0xa8] sm:$0xff] %vm66_vm2, %v121_v0 }
  0x2d   :  { %82 = vst.msk [vmem:[%s296_s1 + $0xb0] sm:$0xff] %vm66_vm2, %v121_v0 }
  0x2e   :  { %87 = vsyncpa [#allocation3], 1 }

</bundles_post_ra>
